<compile_context>
chip_gen: v7x
topology: tpu7x:2x2x1
jax: 0.10.0
libtpu: 0.0.40
codegen_flags: <defaults>
</compile_context>

<pallas_src>
import jax
import jax.numpy as jnp
from jax import lax
from jax.experimental import pallas as pl
from jax.experimental.pallas import tpu as pltpu


def _round_up(x, m):
    return ((x + m - 1) // m) * m


def _default_vmem_limit():
    try:
        cap = int(pltpu.get_tpu_info().vmem_capacity_bytes)
        if cap > 0:
            return int(min(100 * 1024 * 1024, (cap * 3) // 4))
    except Exception:
        pass
    return 64 * 1024 * 1024


def _pick_tile_i(H, I, itemsize, vmem_limit_bytes):
    """Largest I-chunk whose double-buffered gate/up/down blocks fit ~half of VMEM."""
    budget = vmem_limit_bytes // 2

    def cost(ti):
        return 2 * 3 * H * ti * itemsize   # 2 buffers x (wg + wu + wd) chunks

    if cost(I) <= budget or I % 128 != 0:
        return I
    c = I // 128
    for d in range(c, 0, -1):
        if c % d == 0 and cost(d * 128) <= budget:
            return d * 128
    return 128


# ----------------------------- Kernel 1: router gate (x @ Wg) -----------------
def _gate_kernel(x_ref, wg_ref, logits_ref):
    logits_ref[...] = jnp.dot(
        x_ref[...], wg_ref[...], preferred_element_type=jnp.float32
    )


def router_logits(x, gate_w, tile_t=256, vmem_limit_bytes=None):
    """x: [T, H], gate_w: [H, E] -> f32 logits [T, E] (token-tiled)."""
    T, H = x.shape
    E = gate_w.shape[1]
    tile_t = _round_up(min(tile_t, _round_up(T, 8)), 8)
    T_pad = _round_up(T, tile_t)
    xp = jnp.pad(x, ((0, T_pad - T), (0, 0))) if T_pad != T else x

    out = pl.pallas_call(
        _gate_kernel,
        out_shape=jax.ShapeDtypeStruct((T_pad, E), jnp.float32),
        grid_spec=pltpu.PrefetchScalarGridSpec(
            num_scalar_prefetch=0,
            grid=(T_pad // tile_t,),
            in_specs=[
                pl.BlockSpec((tile_t, H), lambda t: (t, 0)),
                pl.BlockSpec((H, E), lambda t: (0, 0)),
            ],
            out_specs=pl.BlockSpec((tile_t, E), lambda t: (t, 0)),
        ),
        compiler_params=pltpu.CompilerParams(
            dimension_semantics=("parallel",),
            vmem_limit_bytes=vmem_limit_bytes,
        ),
    )(xp, gate_w)
    return out[:T] if T_pad != T else out


# -------------- Kernel 2a: grouped-GEMM experts (prefill path) ----------------
def _grouped_moe_kernel(
    xt_ref,      # SMEM [n_tiles] int32: x/rw block index per row tile (clamped tail)
    gids_ref,    # SMEM [n_tiles] int32: expert id per row tile (clamped tail)
    nvalid_ref,  # SMEM [1]       int32: number of valid row tiles
    x_ref,       # VMEM [tm, H]          expert-grouped activations
    rw_ref,      # VMEM [tm, 1]   f32    per-row routing weight (0 for padding rows)
    wg_ref,      # VMEM [H, tile_i]      gate proj chunk of expert gids[t]
    wu_ref,      # VMEM [H, tile_i]      up   proj chunk
    wd_ref,      # VMEM [tile_i, H]      down proj chunk
    out_ref,     # VMEM [tm, H]
    acc_ref,     # VMEM [tm, H] f32 scratch
):
    t = pl.program_id(0)
    i = pl.program_id(1)

    @pl.when(i == 0)
    def _():
        acc_ref[...] = jnp.zeros_like(acc_ref)

    @pl.when(t < nvalid_ref[0])
    def _():
        x = x_ref[...]
        gate = jnp.dot(x, wg_ref[...], preferred_element_type=jnp.float32)
        up = jnp.dot(x, wu_ref[...], preferred_element_type=jnp.float32)
        act = (gate * jax.nn.sigmoid(gate)) * up
        act = act * rw_ref[...]                       # fold routing weight on [tm, tile_i]
        acc_ref[...] += jnp.dot(
            act.astype(wd_ref.dtype), wd_ref[...],
            preferred_element_type=jnp.float32,
        )

    @pl.when(i == pl.num_programs(1) - 1)
    def _():
        out_ref[...] = acc_ref[...].astype(out_ref.dtype)


def _grouped_experts(x, topk_w, topk_ids, w_gate, w_up, w_down,
                     tile_rows, tile_i, vmem_limit_bytes):
    T, H = x.shape
    E, _, I = w_gate.shape
    k = topk_ids.shape[1]
    A = T * k                                               # number of assignments

    tile_rows = _round_up(max(8, min(tile_rows, _round_up(A, 8))), 8)
    if tile_i is None:
        tile_i = _pick_tile_i(H, I, jnp.dtype(w_gate.dtype).itemsize, vmem_limit_bytes)
    assert I % tile_i == 0 and (tile_i == I or tile_i % 128 == 0)

    # ---- routing bookkeeping (XLA glue) ---------------------------------------
    expert_flat = topk_ids.reshape(A).astype(jnp.int32)
    weight_flat = topk_w.reshape(A).astype(jnp.float32)
    token_flat = jnp.arange(A, dtype=jnp.int32) // k

    order = jnp.argsort(expert_flat)                        # sort assignments by expert
    expert_sorted = expert_flat[order]
    token_sorted = token_flat[order]
    weight_sorted = weight_flat[order]

    counts = jnp.zeros((E,), jnp.int32).at[expert_flat].add(1)
    padded_counts = jnp.where(
        counts > 0, ((counts + tile_rows - 1) // tile_rows) * tile_rows, 0)
    group_start = jnp.cumsum(counts) - counts
    padded_start = jnp.cumsum(padded_counts) - padded_counts
    padded_end = jnp.cumsum(padded_counts)
    total_padded = padded_end[E - 1]

    # Static capacity for the per-expert tile-padded layout.
    max_groups = int(min(E, A))
    R = _round_up(A + (tile_rows - 1) * max_groups, tile_rows)
    n_tiles = R // tile_rows

    # Destination position of each sorted assignment inside the padded layout.
    pos = padded_start[expert_sorted] + (
        jnp.arange(A, dtype=jnp.int32) - group_start[expert_sorted])
    row_token = jnp.full((R,), T, dtype=jnp.int32).at[pos].set(token_sorted)   # pad -> dummy T
    row_weight = jnp.zeros((R,), jnp.float32).at[pos].set(weight_sorted)

    x_rows = x[jnp.minimum(row_token, T - 1)]               # [R, H] gather (pad rows reuse a real row)
    rw = row_weight[:, None]                                # [R, 1] f32

    # Per-tile expert id / validity (scalar-prefetch tables).
    tile_start = jnp.arange(n_tiles, dtype=jnp.int32) * tile_rows
    gid_raw = jnp.searchsorted(padded_end, tile_start, side="right").astype(jnp.int32)
    n_valid = (total_padded // tile_rows).astype(jnp.int32)
    last_valid = jnp.maximum(n_valid - 1, 0)
    gid_last = gid_raw[last_valid]
    valid_tile = tile_start < total_padded
    tile_gid = jnp.where(valid_tile, gid_raw, gid_last).astype(jnp.int32)
    xtile_ids = jnp.where(
        valid_tile, jnp.arange(n_tiles, dtype=jnp.int32), last_valid).astype(jnp.int32)
    n_valid_arr = n_valid.reshape(1)

    n_i = I // tile_i
    y = pl.pallas_call(
        _grouped_moe_kernel,
        out_shape=jax.ShapeDtypeStruct((R, H), x.dtype),
        grid_spec=pltpu.PrefetchScalarGridSpec(
            num_scalar_prefetch=3,
            grid=(n_tiles, n_i),
            in_specs=[
                # activations / routing weights: resident across I chunks, tail tiles
                # clamped to the last valid tile so no extra DMAs happen.
                pl.BlockSpec((tile_rows, H), lambda t, i, xt, gids, nv: (xt[t], 0)),
                pl.BlockSpec((tile_rows, 1), lambda t, i, xt, gids, nv: (xt[t], 0)),
                # expert weight chunks: same expert across consecutive tiles -> no re-DMA
                # when n_i == 1 (weights stream ~once per active expert).
                pl.BlockSpec((None, H, tile_i), lambda t, i, xt, gids, nv: (gids[t], 0, i)),
                pl.BlockSpec((None, H, tile_i), lambda t, i, xt, gids, nv: (gids[t], 0, i)),
                pl.BlockSpec((None, tile_i, H), lambda t, i, xt, gids, nv: (gids[t], i, 0)),
            ],
            out_specs=pl.BlockSpec((tile_rows, H), lambda t, i, xt, gids, nv: (t, 0)),
            scratch_shapes=[pltpu.VMEM((tile_rows, H), jnp.float32)],
        ),
        compiler_params=pltpu.CompilerParams(
            dimension_semantics=("parallel", "arbitrary"),
            vmem_limit_bytes=vmem_limit_bytes,
        ),
    )(xtile_ids, tile_gid, n_valid_arr, x_rows, rw, w_gate, w_up, w_down)

    # Un-permute: scatter-add per-assignment rows back to tokens (weights already folded).
    # Padding rows carry token id T -> land in a dummy row that is sliced off.
    out = jnp.zeros((T + 1, H), jnp.float32).at[row_token].add(y.astype(jnp.float32))
    return out[:T].astype(x.dtype)


# ------------- Kernel 2b: dense token-tile x active-expert (decode path) ------
def _moe_dense_kernel(
    eids_ref,      # SMEM [G]  int32: sorted active expert ids, padded w/ last id
    nact_ref,      # SMEM [1]  int32: number of active experts
    x_ref,         # VMEM [tile_t, H]
    rw_ref,        # VMEM [tile_t, 1]  f32
    wg_ref,        # VMEM [H, I]
    wu_ref,        # VMEM [H, I]
    wd_ref,        # VMEM [I, H]
    out_ref,       # VMEM [tile_t, H]
    acc_ref,       # VMEM [tile_t, H] f32 scratch
):
    g = pl.program_id(1)

    @pl.when(g == 0)
    def _():
        acc_ref[...] = jnp.zeros_like(acc_ref)

    @pl.when(g < nact_ref[0])
    def _():
        x = x_ref[...]
        gate = jnp.dot(x, wg_ref[...], preferred_element_type=jnp.float32)
        up = jnp.dot(x, wu_ref[...], preferred_element_type=jnp.float32)
        act = (gate * jax.nn.sigmoid(gate)) * up
        act = act * rw_ref[...]                      # fold routing weight before down proj
        acc_ref[...] += jnp.dot(
            act.astype(wd_ref.dtype), wd_ref[...],
            preferred_element_type=jnp.float32,
        )

    @pl.when(g == pl.num_programs(1) - 1)
    def _():
        out_ref[...] = acc_ref[...].astype(out_ref.dtype)


def _dense_experts(x, topk_w, topk_ids, w_gate, w_up, w_down, tile_t, vmem_limit_bytes):
    T, H = x.shape
    E, _, I = w_gate.shape
    k = topk_ids.shape[1]

    tile_t = _round_up(min(tile_t, _round_up(T, 8)), 8)
    T_pad = _round_up(T, tile_t)
    xp = jnp.pad(x, ((0, T_pad - T), (0, 0))) if T_pad != T else x

    # Dense [T_pad, E] routing weights via scatter-add (no one_hot blow-up).
    dense_w = jnp.zeros((T_pad, E), jnp.float32).at[
        jnp.arange(T, dtype=jnp.int32)[:, None], topk_ids].add(topk_w.astype(jnp.float32))
    routing_ett1 = jnp.transpose(dense_w, (1, 0))[:, :, None]   # [E, T_pad, 1]

    # Active-expert schedule (scalar prefetch): only active experts execute.
    is_active = jnp.max(dense_w, axis=0) > 0.0
    num_active = jnp.sum(is_active).astype(jnp.int32)
    eidx = jnp.arange(E, dtype=jnp.int32)
    order = jnp.argsort(jnp.where(is_active, eidx, E + eidx)).astype(jnp.int32)
    G = int(min(E, T * k))
    pos = jnp.arange(G, dtype=jnp.int32)
    last_active = order[jnp.maximum(num_active - 1, 0)]
    active_ids = jnp.where(pos < num_active, order[:G], last_active).astype(jnp.int32)
    nact = num_active.reshape(1)

    out = pl.pallas_call(
        _moe_dense_kernel,
        out_shape=jax.ShapeDtypeStruct((T_pad, H), x.dtype),
        grid_spec=pltpu.PrefetchScalarGridSpec(
            num_scalar_prefetch=2,
            grid=(T_pad // tile_t, G),
            in_specs=[
                pl.BlockSpec((tile_t, H), lambda t, g, eids, na: (t, 0)),
                pl.BlockSpec((None, tile_t, 1), lambda t, g, eids, na: (eids[g], t, 0)),
                pl.BlockSpec((None, H, I), lambda t, g, eids, na: (eids[g], 0, 0)),
                pl.BlockSpec((None, H, I), lambda t, g, eids, na: (eids[g], 0, 0)),
                pl.BlockSpec((None, I, H), lambda t, g, eids, na: (eids[g], 0, 0)),
            ],
            out_specs=pl.BlockSpec((tile_t, H), lambda t, g, eids, na: (t, 0)),
            scratch_shapes=[pltpu.VMEM((tile_t, H), jnp.float32)],
        ),
        compiler_params=pltpu.CompilerParams(
            dimension_semantics=("parallel", "arbitrary"),
            vmem_limit_bytes=vmem_limit_bytes,
        ),
    )(active_ids, nact, xp, routing_ett1, w_gate, w_up, w_down)
    return out[:T] if T_pad != T else out


# ----------------------------- Module wrapper ---------------------------------
def qwen3_moe_sparse_block(
    hidden_states,          # [num_tokens, hidden_dim]
    gate_w,                 # [hidden_dim, num_experts]
    w_gate, w_up, w_down,   # [E, H, I], [E, H, I], [E, I, H]
    top_k,
    renormalize=True,
    use_grouped=None,       # None -> grouped-GEMM for prefill (T >= 64), dense for decode
    tile_rows=512,          # grouped path: rows (token*expert assignments) per tile
    tile_i=None,            # grouped path: intermediate-dim chunk (None -> auto from VMEM)
    dense_tile_t=256,       # dense decode path: token tile
    vmem_limit_bytes=None,
):
    T, H = hidden_states.shape
    if vmem_limit_bytes is None:
        vmem_limit_bytes = _default_vmem_limit()
    if use_grouped is None:
        use_grouped = T >= 64

    # --- routing (gate matmul in Pallas; softmax/top-k glue in plain JAX) ------
    logits = router_logits(hidden_states, gate_w, vmem_limit_bytes=vmem_limit_bytes)
    probs = jax.nn.softmax(logits, axis=-1)
    topk_w, topk_ids = lax.top_k(probs, top_k)               # [T, k]
    if renormalize:
        topk_w = topk_w / jnp.sum(topk_w, axis=-1, keepdims=True)

    if use_grouped:
        out = _grouped_experts(hidden_states, topk_w, topk_ids, w_gate, w_up, w_down,
                               tile_rows=tile_rows, tile_i=tile_i,
                               vmem_limit_bytes=vmem_limit_bytes)
    else:
        out = _dense_experts(hidden_states, topk_w, topk_ids, w_gate, w_up, w_down,
                             tile_t=dense_tile_t, vmem_limit_bytes=vmem_limit_bytes)
    return out.reshape(T, H)


# ----------------------------- Demo / self-test --------------------------------
if __name__ == "__main__":
    # Small synthetic Qwen3-MoE config (T deliberately not a tile multiple).
    num_tokens = 12
    hidden_size = 128
    intermediate_size = 256
    num_experts = 8
    top_k = 2            # num_experts_per_tok
    norm_topk_prob = True

    key = jax.random.PRNGKey(0)
    k_x, k_g, k_wg, k_wu, k_wd = jax.random.split(key, 5)

    x = jax.random.normal(k_x, (num_tokens, hidden_size), dtype=jnp.float32)
    gate_w = jax.random.normal(k_g, (hidden_size, num_experts), dtype=jnp.float32) * 0.05
    w_gate = jax.random.normal(
        k_wg, (num_experts, hidden_size, intermediate_size), dtype=jnp.float32) * 0.05
    w_up = jax.random.normal(
        k_wu, (num_experts, hidden_size, intermediate_size), dtype=jnp.float32) * 0.05
    w_down = jax.random.normal(
        k_wd, (num_experts, intermediate_size, hidden_size), dtype=jnp.float32) * 0.05

    # Grouped-GEMM (prefill) path: small row tile + I-chunking exercises both grid axes.
    out_grouped = qwen3_moe_sparse_block(
        x, gate_w, w_gate, w_up, w_down, top_k, renormalize=norm_topk_prob,
        use_grouped=True, tile_rows=8, tile_i=128)
    out_grouped = jax.block_until_ready(out_grouped)
    assert out_grouped.shape == (num_tokens, hidden_size)

    # Dense (decode) path.
    out_dense = qwen3_moe_sparse_block(
        x, gate_w, w_gate, w_up, w_down, top_k, renormalize=norm_topk_prob,
        use_grouped=False, dense_tile_t=8)
    out_dense = jax.block_until_ready(out_dense)
    assert out_dense.shape == (num_tokens, hidden_size)

    # --- reference -------------------------------------------------------------
    # 1) Router matmul correctness.
    logits_pallas = router_logits(x, gate_w)
    logits_exact = x @ gate_w
    assert jnp.allclose(logits_pallas, logits_exact, atol=1e-3, rtol=1e-3), (
        float(jnp.max(jnp.abs(logits_pallas - logits_exact))))

    # 2) Expert combine correctness; routing derived from the same (Pallas) logits
    #    so a near-tie in top-k cannot flip between kernel and reference.
    probs_ref = jax.nn.softmax(logits_pallas, axis=-1)
    tw, ti = lax.top_k(probs_ref, top_k)
    tw = tw / jnp.sum(tw, axis=-1, keepdims=True)
    dense_ref = jnp.zeros((num_tokens, num_experts), jnp.float32).at[
        jnp.arange(num_tokens)[:, None], ti].add(tw)
    g_ = jnp.einsum("th,ehi->eti", x, w_gate)
    u_ = jnp.einsum("th,ehi->eti", x, w_up)
    o_ = jnp.einsum("eti,eih->eth", jax.nn.silu(g_) * u_, w_down)
    ref = jnp.einsum("te,eth->th", dense_ref, o_)

    err_g = float(jnp.max(jnp.abs(out_grouped - ref)))
    err_d = float(jnp.max(jnp.abs(out_dense - ref)))
    assert jnp.allclose(out_grouped, ref, atol=2e-3, rtol=2e-3), err_g
    assert jnp.allclose(out_dense, ref, atol=2e-3, rtol=2e-3), err_d

    print("KERNEL_OK")
</pallas_src>

<mosaic_0001>
module attributes {stable_mosaic.version = 11 : i64} {
  func.func @_gate_kernel(%arg0: i32, %arg1: memref<16x128xf32, #tpu.memory_space<vmem>>, %arg2: memref<128x8xf32, #tpu.memory_space<vmem>>, %arg3: memref<16x8xf32, #tpu.memory_space<vmem>>) attributes {dimension_semantics = [#tpu.dimension_semantics<parallel>], iteration_bounds = array<i64: 1>, scalar_prefetch = 0 : i64, scratch_operands = 0 : i64, tpu.core_type = #tpu.core_type<tc>, window_params = [{transform_indices = @transform_0, window_bounds = array<i64: 16, 128>}, {pipeline_mode = #tpu.pipeline_mode<synchronous>, transform_indices = @transform_1, window_bounds = array<i64: 128, 8>}, {transform_indices = @transform_2, window_bounds = array<i64: 16, 8>}]} {
    %c0 = arith.constant 0 : index
    %c0_0 = arith.constant 0 : index
    %0 = vector.load %arg1[%c0, %c0_0] : memref<16x128xf32, #tpu.memory_space<vmem>>, vector<16x128xf32>
    %c0_1 = arith.constant 0 : index
    %c0_2 = arith.constant 0 : index
    %1 = vector.load %arg2[%c0_1, %c0_2] : memref<128x8xf32, #tpu.memory_space<vmem>>, vector<128x8xf32>
    %cst = arith.constant dense<0.000000e+00> : vector<16x8xf32>
    %2 = tpu.matmul %0, %1, %cst {dimension_numbers = #tpu.dot_dimension_numbers<[1], [0], [0], [1], [0, 0, 1, 1], [], []>} : vector<16x128xf32>, vector<128x8xf32>, vector<16x8xf32> -> vector<16x8xf32>
    %c0_3 = arith.constant 0 : index
    %c0_4 = arith.constant 0 : index
    %3 = vector.load %arg3[%c0_3, %c0_4] : memref<16x8xf32, #tpu.memory_space<vmem>>, vector<16x8xf32>
    tpu.vector_store %arg3[%c0_3, %c0_4], %2 {strides = array<i32>} : memref<16x8xf32, #tpu.memory_space<vmem>>, vector<16x8xf32>,
    return
  }
  func.func @transform_0(%arg0: i32) -> (i32, i32) {
    %c0_i32 = arith.constant 0 : i32
    %c0_i32_0 = arith.constant 0 : i32
    return %arg0, %c0_i32 : i32, i32
  }
  func.func @transform_1(%arg0: i32) -> (i32, i32) {
    %c0_i32 = arith.constant 0 : i32
    %c0_i32_0 = arith.constant 0 : i32
    %c0_i32_1 = arith.constant 0 : i32
    return %c0_i32, %c0_i32_0 : i32, i32
  }
  func.func @transform_2(%arg0: i32) -> (i32, i32) {
    %c0_i32 = arith.constant 0 : i32
    %c0_i32_0 = arith.constant 0 : i32
    return %arg0, %c0_i32 : i32, i32
  }
}

</mosaic_0001>

<bundles_post_ra>
// kernel: tpu_custom_call.1
= control target key start
LH: loop header
LB: loop body
LE: loop exit
PB: predicated region body
PF: predicated region fallthrough
CT: control target
= control target key end

     0   :  { %7 = vsyncpa [#allocation3], 0  ;;  %s381_s0 = inlined_call_operand.hbm [shape: f32[16,128], index: 0, kind: input, shape index: {}]   ;;  %s382_s1 = inlined_call_operand.hbm [shape: f32[128,8], index: 1, kind: input, shape index: {}]   ;;  %s383_s2 = inlined_call_operand.hbm [shape: f32[16,8], index: 2, kind: output, shape index: {}]  }
   0x1   :  { %8 = vsyncpa [#allocation6], 0 }
   0x2   :  { %9 = vsyncpa [#allocation4], 0  ;;  %s316_s9 = smov [#allocation2]   ;;  %s244_s13 = scalar_lea.hbm %s381_s0, 256 }
   0x3   :  { %s15_s10 = sshll.u32 %s316_s9, 4  ;;  %p245_p0 = scmp.ne.s32.totalorder %s381_s0, %s244_s13  ;;  %s16_s10 = int_to_ptr.vmem [resolvable:$true] %s15_s10 }
   0x4   :  { %p248_p1 = scmp.lt.u32.totalorder %s244_s13, %s381_s0 }
   0x6   :  { %p250_p2 = pnand %p248_p1, %p245_p0 }
   0x8   :  { %253 = shalt.err (!%p250_p2)
}
   0x9   :  { %s254_s18 = scalar_lea.vmem %s16_s10, 256  ;;  %p259_p4 = scmp.lt.s32.totalorder %s16_s10, %s16_s10 }
   0xa   :  { %p255_p3 = scmp.ne.s32.totalorder %s16_s10, %s254_s18  ;;  %p260_p5 = scmp.lt.s32.totalorder %s254_s18, %s254_s18 }
   0xc   :  { %p261_p6 = por %p260_p5, %p259_p4 }
   0xe   :  { %p262_p7 = pnand %p261_p6, %p255_p3 }
  0x10   :  { %265 = shalt.err (!%p262_p7)
}
  0x11   :  { %s317_s19 = smov 128   ;;  %s318_s20 = smov 8  }
  0x12   :  { %21 = dma.hbm_to_vmem [thread:$0]  %s381_s0, 256, %s16_s10, [#allocation3], %s317_s19, %s317_s19, %s318_s20  }
  0x13   :  { %s319_s23 = smov [#allocation5]   ;;  %s266_s27 = scalar_lea.hbm %s382_s1, 2048 }
  0x14   :  { %s27_s24 = sshll.u32 %s319_s23, 4  ;;  %p267_p8 = scmp.ne.s32.totalorder %s382_s1, %s266_s27  ;;  %s28_s24 = int_to_ptr.vmem [resolvable:$true] %s27_s24 }
  0x15   :  { %p270_p9 = scmp.lt.u32.totalorder %s266_s27, %s382_s1 }
  0x17   :  { %p272_p10 = pnand %p270_p9, %p267_p8 }
  0x19   :  { %275 = shalt.err (!%p272_p10)
}
  0x1a   :  { %s276_s4 = scalar_lea.vmem %s28_s24, 2048  ;;  %p281_p12 = scmp.lt.s32.totalorder %s28_s24, %s28_s24 }
  0x1b   :  { %p277_p11 = scmp.ne.s32.totalorder %s28_s24, %s276_s4  ;;  %p282_p13 = scmp.lt.s32.totalorder %s276_s4, %s276_s4 }
  0x1d   :  { %p283_p0 = por %p282_p13, %p281_p12 }
  0x1f   :  { %p284_p1 = pnand %p283_p0, %p277_p11 }
  0x21   :  { %287 = shalt.err (!%p284_p1)
}
  0x22   :  { %33 = dma.hbm_to_vmem [thread:$0]  %s382_s1, 2048, %s28_s24, [#allocation6], %s317_s19, %s317_s19, %s318_s20  }
  0x23   :  { %310 = dma.done.wait [#allocation3], 256  }
  0x24   :  { %311 = vsyncadd [#allocation3], 4294967040 }
  0x25   :  { %312 = dma.done.wait [#allocation6], 2048  }
  0x26   :  { %313 = vsyncadd [#allocation6], 4294965248  ;;  %v42_v0 = vld [vmem:[#allocation5] sm:$0xff]  ;;  %v43_v1 = vld [vmem:[#allocation5 + $0x8] sm:$0xff]  ;;  %s320_s1 = smov [#allocation7]   ;;  %vm133_vm0 = vcmask 64512  }
  0x27   :  { %v44_v2 = vld [vmem:[#allocation5 + $0x10] sm:$0xff]  ;;  %v207_v3 = vpack.c.bf16 %v43_v1, %v42_v0  ;;  %v45_v4 = vld [vmem:[#allocation5 + $0x18] sm:$0xff]  ;;  %v46_v6 = vld [vmem:[#allocation5 + $0x20] sm:$0xff]  ;;  %s141_s6 = sshll.u32 %s320_s1, 4  ;;  %s142_s6 = int_to_ptr.vmem [resolvable:$true] %s141_s6 }
  0x28   :  { %v211_v5 = vpack.c.bf16 %v45_v4, %v44_v2  ;;  %v47_v7 = vld [vmem:[#allocation5 + $0x28] sm:$0xff]  ;;  %v40_v9 = vld [vmem:[#allocation2] sm:$0xff]  ;;  %v49_v11 = vld [vmem:[#allocation5 + $0x38] sm:$0xff]  ;;  %s288_s7 = scalar_lea.vmem %s142_s6, 256  ;;  %p293_p3 = scmp.lt.s32.totalorder %s142_s6, %s142_s6 }
  0x29   :  { %208 = vmatprep.subr.bf16.mxu0 %v207_v3  ;;  %v215_v8 = vpack.c.bf16 %v47_v7, %v46_v6  ;;  %v48_v10 = vld [vmem:[#allocation5 + $0x30] sm:$0xff]  ;;  %204 = vmatprep.mubr.f32.mxu0 %v40_v9  ;;  %v50_v13 = vld [vmem:[#allocation5 + $0x40] sm:$0xff]  ;;  %v51_v14 = vld [vmem:[#allocation5 + $0x48] sm:$0xff]  ;;  %p289_p2 = scmp.ne.s32.totalorder %s142_s6, %s288_s7  ;;  %p294_p4 = scmp.lt.s32.totalorder %s288_s7, %s288_s7 }
  0x2a   :  { %210 = vmatpush3.bf16.msra.mxu0 %v207_v3  ;;  %v219_v12 = vpack.c.bf16 %v49_v11, %v48_v10  ;;  %v223_v15 = vpack.c.bf16 %v51_v14, %v50_v13  ;;  %v52_v16 = vld [vmem:[#allocation5 + $0x50] sm:$0xff]  ;;  %v53_v17 = vld [vmem:[#allocation5 + $0x58] sm:$0xff]  ;;  %v54_v19 = vld [vmem:[#allocation5 + $0x60] sm:$0xff] }
  0x2b   :  { %212 = vmatprep.subr.bf16.mxu0 %v211_v5  ;;  %v227_v18 = vpack.c.bf16 %v53_v17, %v52_v16  ;;  %v55_v20 = vld [vmem:[#allocation5 + $0x68] sm:$0xff]  ;;  %v56_v22 = vld [vmem:[#allocation5 + $0x70] sm:$0xff]  ;;  %v57_v23 = vld [vmem:[#allocation5 + $0x78] sm:$0xff]  ;;  %p295_p5 = por %p294_p4, %p293_p3 }
  0x2c   :  { %v231_v21 = vpack.c.bf16 %v55_v20, %v54_v19  ;;  %v235_v24 = vpack.c.bf16 %v57_v23, %v56_v22  ;;  %v41_v25 = vld [vmem:[#allocation2 + $0x8] sm:$0xff] }
  0x2d   :  { %p296_p6 = pnand %p295_p5, %p289_p2 }
  0x2e   :  { %214 = vmatpush3.bf16.msra.mxu0 %v211_v5 }
  0x2f   :  { %216 = vmatprep.subr.bf16.mxu0 %v215_v8 }
  0x32   :  { %218 = vmatpush3.bf16.msra.mxu0 %v215_v8 }
  0x33   :  { %220 = vmatprep.subr.bf16.mxu0 %v219_v12 }
  0x36   :  { %222 = vmatpush3.bf16.msra.mxu0 %v219_v12 }
  0x37   :  { %224 = vmatprep.subr.bf16.mxu0 %v223_v15 }
  0x3a   :  { %226 = vmatpush3.bf16.msra.mxu0 %v223_v15 }
  0x3b   :  { %228 = vmatprep.subr.bf16.mxu0 %v227_v18 }
  0x3e   :  { %230 = vmatpush3.bf16.msra.mxu0 %v227_v18 }
  0x3f   :  { %232 = vmatprep.subr.bf16.mxu0 %v231_v21 }
  0x42   :  { %234 = vmatpush3.bf16.msra.mxu0 %v231_v21 }
  0x43   :  { %236 = vmatprep.subr.bf16.mxu0 %v235_v24 }
  0x46   :  { %238 = vmatpush3.bf16.msra.mxu0 %v235_v24 }
  0x49   :  { %205 = vmatmul.mubr.f32.vlgmr.msra.gmra.mrb[0].mxu0 %v41_v25 }
 0x11c   :  { %v206_v26 = vpop.f32.mrb[0].mxu0 }
 0x11d   :  { %135 = vst.msk [vmem:[#allocation7 + $0x8] sm:$0xff] %vm133_vm0, %v206_v26  ;;  %v124_v27 = vpop.f32.mrb[1].mxu0 }
 0x11e   :  { %134 = vst.msk [vmem:[#allocation7] sm:$0xff] %vm133_vm0, %v124_v27 }
 0x11f   :  { %299 = shalt.err (!%p296_p6)
}
 0x120   :  { %s300_s10 = scalar_lea.hbm %s383_s2, 256 }
 0x121   :  { %p301_p7 = scmp.ne.s32.totalorder %s383_s2, %s300_s10  ;;  %p304_p8 = scmp.lt.u32.totalorder %s300_s10, %s383_s2 }
 0x123   :  { %p306_p9 = pnand %p304_p8, %p301_p7 }
 0x125   :  { %309 = shalt.err (!%p306_p9)
}
 0x126   :  { %147 = dma.vmem_to_hbm [thread:$0]  %s142_s6, 256, %s383_s2, [#allocation4], %s317_s19, %s317_s19, %s318_s20  }
 0x127   :  { %314 = dma.done.wait [#allocation4], 256  }
 0x128   :  { %315 = vsyncadd [#allocation4], 4294967040 }
 0x129   :  { %151 = vsyncpa [#allocation3], 1 }
 0x12a   :  { %152 = vsyncpa [#allocation6], 1 }
 0x12b   :  { %153 = vsyncpa [#allocation4], 1 }

</bundles_post_ra>
